<compile_context>
chip_gen: v6e
topology: v6e:2x2x1
jax: 0.10.0
libtpu: 0.0.40
codegen_flags: <defaults>
</compile_context>

<pallas_src>
import math

import jax
import jax.numpy as jnp
from jax.experimental import pallas as pl
from jax.experimental.pallas import tpu as pltpu


# ---------------------------------------------------------------------------
# Kernels
# ---------------------------------------------------------------------------

def _ln_grouped_kernel(x_ref, seg_ref, bcast_ref, w_ref, o_ref):
    """Lane-dense kernel: each row of x holds G independent groups of C channels.

    x_ref:     (TR, W)  input block, W = G*C (W % 128 == 0 -> dense lanes)
    seg_ref:   (W, G)   bf16 0/1 block-diagonal "segmented sum" matrix
    bcast_ref: (G, W)   bf16 0/1 transpose (group -> lane broadcast)
    w_ref:     (1, W)   f32 weight, tiled per group (weight[lane % C])
    o_ref:     (TR, W)  output block
    """
    x = x_ref[...].astype(jnp.float32)           # (TR, W)
    seg = seg_ref[...]                           # (W, G) bf16, entries 0/1
    bcast = bcast_ref[...]                       # (G, W) bf16, entries 0/1
    w = w_ref[...]                               # (1, W) f32
    w_dim = x.shape[-1]
    g = seg.shape[-1]
    inv_c = jnp.float32(g / w_dim)               # = 1/C

    def exact_group_dot(a, m):
        # f32-accurate A @ M for a 0/1 matrix M, regardless of how the MXU
        # truncates its inputs: split A into bf16 hi/lo parts (both exactly
        # representable) and do two single-pass bf16 matmuls with f32 accumulation.
        a_hi = a.astype(jnp.bfloat16)
        a_lo = (a - a_hi.astype(jnp.float32)).astype(jnp.bfloat16)
        return (jnp.dot(a_hi, m, preferred_element_type=jnp.float32)
                + jnp.dot(a_lo, m, preferred_element_type=jnp.float32))

    # Two-pass, per-group statistics (all reductions/broadcasts on the idle MXU).
    mean_g = exact_group_dot(x, seg) * inv_c             # (TR, G) row means
    mean_b = exact_group_dot(mean_g, bcast)              # (TR, W) broadcast back
    d = x - mean_b
    var_g = exact_group_dot(d * d, seg) * inv_c          # (TR, G) biased variance
    inv_std_g = jax.lax.rsqrt(var_g + jnp.float32(1e-5))
    scale = exact_group_dot(inv_std_g, bcast) * w        # (TR, W) inv_std * weight
    # NOTE: x itself is NOT mean-centered in the module's output.
    o_ref[...] = (x * scale).astype(o_ref.dtype)


def _ln_rowwise_kernel(x_ref, w_ref, o_ref):
    """Plain per-row kernel (used when C is already a multiple of 128, or as the
    fallback for channel counts that are not a multiple of 8)."""
    x = x_ref[...].astype(jnp.float32)           # (TR, C)
    w = w_ref[...]                               # (1, C) f32
    inv_c = jnp.float32(1.0 / x.shape[-1])
    mean = jnp.sum(x, axis=-1, keepdims=True) * inv_c
    d = x - mean
    var = jnp.sum(d * d, axis=-1, keepdims=True) * inv_c
    scale = jax.lax.rsqrt(var + jnp.float32(1e-5)) * w   # (TR, C)
    o_ref[...] = (x * scale).astype(o_ref.dtype)


# ---------------------------------------------------------------------------
# Tiling helpers
# ---------------------------------------------------------------------------

def _target_block_bytes():
    """Per-block DMA payload target.

    ~1-2 MiB keeps the ~0.35us/step pipeline overhead negligible while leaving
    ample VMEM headroom for the double-buffered input+output blocks plus the
    in-kernel f32 temporaries (total stays well under the 32 MiB scoped limit).
    """
    try:
        info = pltpu.get_tpu_info()
        vmem = getattr(info, "vmem_capacity_bytes", 0) or 0
        if vmem >= 100 * 1024 * 1024:      # v5e / v6e class: 128 MiB physical VMEM
            return 2 * 1024 * 1024
    except Exception:
        pass
    return 1 * 1024 * 1024                 # v7x class (64 MiB / TC) or unknown


def _choose_row_tile(r2, row_bytes):
    """Pick (tile_rows, padded_rows) for a (r2, W) dense array with row_bytes per row.

    Returns tile_rows that is either the full array (single grid step) or an
    8-aligned count; padded_rows == r2 whenever an exactly dividing tile exists.
    """
    SUB = 8                                # f32 sublane granularity
    SMALL = 1 * 1024 * 1024                # single-step fast path threshold
    total = r2 * row_bytes
    if total <= SMALL or r2 <= SUB:
        return r2, r2                      # grid=(1,): block == whole array

    target = _target_block_bytes()
    tr = max(SUB, min(r2, target // max(1, row_bytes)) // SUB * SUB)
    # Keep >= 4 grid steps when rows allow: on v7x ("parallel" grid axis) that is
    # >= 2 steps per TensorCore, so each core still overlaps DMA with compute.
    tr = min(tr, max(SUB, (r2 // 4) // SUB * SUB))

    if r2 % SUB == 0:
        t = tr
        while t > SUB and r2 % t != 0:
            t -= SUB
        if r2 % t == 0 and 2 * t >= tr:
            return t, r2                   # exact divisor: no pad copy needed

    # Fallback: pad rows up to a multiple of the target tile (< one tile added).
    return tr, -(-r2 // tr) * tr


# ---------------------------------------------------------------------------
# Wrapper
# ---------------------------------------------------------------------------

def biasfree_layernorm(x, weight):
    """x: (..., C) array, weight: (C,) array. Normalizes over the last dim."""
    orig_shape = x.shape
    C = int(orig_shape[-1])
    rows = 1
    for d in orig_shape[:-1]:
        rows *= int(d)
    rows = max(rows, 1)
    itemsize = jnp.dtype(x.dtype).itemsize

    x2d = x.reshape(rows, C)
    w32 = weight.astype(jnp.float32)

    # Fold factor: G rows per lane-dense row so that W = G*C is a multiple of 128.
    # Only fold when C % 8 == 0 (then G <= 16 and the helper matrices stay tiny);
    # C % 128 == 0 is already lane-dense; other C fall back to the masked path.
    if C % 128 != 0 and C % 8 == 0:
        G = 128 // math.gcd(C, 128)
    else:
        G = 1
    W = G * C

    r2 = -(-rows // G)                       # dense rows needed
    tr, r2_pad = _choose_row_tile(r2, W * itemsize)
    rows_pad = r2_pad * G
    if rows_pad != rows:
        # Zero rows are benign (var=0 -> finite rsqrt); they are sliced off below.
        x2d = jnp.pad(x2d, ((0, rows_pad - rows), (0, 0)))

    grid = (r2_pad // tr,)
    cparams = pltpu.CompilerParams(
        dimension_semantics=("parallel",),
        vmem_limit_bytes=32 * 1024 * 1024,
    )

    if G == 1:
        # Already lane-dense (C % 128 == 0) or masked-lane fallback (C % 8 != 0).
        w_row = w32.reshape(1, C)
        out2d = pl.pallas_call(
            _ln_rowwise_kernel,
            out_shape=jax.ShapeDtypeStruct((rows_pad, C), x.dtype),
            grid_spec=pltpu.PrefetchScalarGridSpec(
                num_scalar_prefetch=0,
                grid=grid,
                in_specs=[
                    pl.BlockSpec((tr, C), lambda i: (i, 0)),
                    pl.BlockSpec((1, C), lambda i: (0, 0)),   # DMA'd once
                ],
                out_specs=pl.BlockSpec((tr, C), lambda i: (i, 0)),
            ),
            compiler_params=cparams,
        )(x2d, w_row)
        if rows_pad != rows:
            out2d = out2d[:rows]
        return out2d.reshape(orig_shape)

    # ---- lane-dense grouped path ------------------------------------------
    xd = x2d.reshape(r2_pad, W)              # free reshape: (rows, C) is contiguous

    lane = jnp.arange(W, dtype=jnp.int32)
    grp = jnp.arange(G, dtype=jnp.int32)
    # 0/1 block-diagonal segmented-sum matrix and its transpose (bf16-exact).
    seg = (lane[:, None] // C == grp[None, :]).astype(jnp.bfloat16)    # (W, G)
    bcast = (grp[:, None] == lane[None, :] // C).astype(jnp.bfloat16)  # (G, W)
    w_row = jnp.tile(w32, (G,)).reshape(1, W)                          # weight[lane % C]

    outd = pl.pallas_call(
        _ln_grouped_kernel,
        out_shape=jax.ShapeDtypeStruct((r2_pad, W), x.dtype),
        grid_spec=pltpu.PrefetchScalarGridSpec(
            num_scalar_prefetch=0,
            grid=grid,
            in_specs=[
                pl.BlockSpec((tr, W), lambda i: (i, 0)),
                pl.BlockSpec((W, G), lambda i: (0, 0)),   # constant index -> resident
                pl.BlockSpec((G, W), lambda i: (0, 0)),
                pl.BlockSpec((1, W), lambda i: (0, 0)),
            ],
            out_specs=pl.BlockSpec((tr, W), lambda i: (i, 0)),
        ),
        compiler_params=cparams,
    )(xd, seg, bcast, w_row)

    out2d = outd.reshape(rows_pad, C)
    if rows_pad != rows:
        out2d = out2d[:rows]
    return out2d.reshape(orig_shape)


# ---------------------------------------------------------------------------
# Reference + self-test
# ---------------------------------------------------------------------------

def _reference(x, weight):
    xf = x.astype(jnp.float32)
    sigma = jnp.var(xf, axis=-1, keepdims=True)          # unbiased=False
    return (xf / jnp.sqrt(sigma + 1e-5) * weight.astype(jnp.float32)).astype(x.dtype)


if __name__ == "__main__":
    B, N, C = 2, 64, 48  # (batch, tokens=8x8, channels); LN over the channel dim

    x = jax.random.normal(jax.random.PRNGKey(0), (B, N, C), dtype=jnp.float32)
    weight = jnp.ones((C,), dtype=jnp.float32)           # module init: torch.ones

    out = jax.block_until_ready(biasfree_layernorm(x, weight))
    ref = _reference(x, weight)
    assert out.shape == x.shape
    assert jnp.allclose(out, ref, rtol=1e-4, atol=2e-5), (
        "mismatch vs reference: %e" % float(jnp.max(jnp.abs(out - ref))))

    # Large per-row offset: guards the variance path against cancellation
    # (the old E[x^2]-E[x]^2 formulation would fail here).
    k1, k2 = jax.random.split(jax.random.PRNGKey(1))
    w2 = jax.random.normal(k1, (C,), dtype=jnp.float32) * 0.5 + 1.0
    x_off = jax.random.normal(k2, (B, N, C), dtype=jnp.float32) + 100.0
    out_off = jax.block_until_ready(biasfree_layernorm(x_off, w2))
    ref_off = _reference(x_off, w2)
    assert jnp.allclose(out_off, ref_off, rtol=2e-4, atol=1e-4), (
        "mismatch vs reference (offset): %e" % float(jnp.max(jnp.abs(out_off - ref_off))))

    # Ragged row count (exercises the row-padding path).
    x3 = jax.random.normal(jax.random.PRNGKey(2), (3, 10, C), dtype=jnp.float32)
    out3 = jax.block_until_ready(biasfree_layernorm(x3, weight))
    ref3 = _reference(x3, weight)
    assert out3.shape == x3.shape
    assert jnp.allclose(out3, ref3, rtol=1e-4, atol=2e-5), (
        "mismatch vs reference (padded): %e" % float(jnp.max(jnp.abs(out3 - ref3))))

    print("KERNEL_OK")
</pallas_src>

<mosaic_0001>
module attributes {stable_mosaic.version = 11 : i64} {
  func.func @_ln_grouped_kernel(%arg0: i32, %arg1: memref<16x384xf32, #tpu.memory_space<vmem>>, %arg2: memref<384x8xbf16, #tpu.memory_space<vmem>>, %arg3: memref<8x384xbf16, #tpu.memory_space<vmem>>, %arg4: memref<1x384xf32, #tpu.memory_space<vmem>>, %arg5: memref<16x384xf32, #tpu.memory_space<vmem>>) attributes {dimension_semantics = [#tpu.dimension_semantics<parallel>], iteration_bounds = array<i64: 1>, scalar_prefetch = 0 : i64, scratch_operands = 0 : i64, tpu.core_type = #tpu.core_type<tc>, window_params = [{transform_indices = @transform_0, window_bounds = array<i64: 16, 384>}, {pipeline_mode = #tpu.pipeline_mode<synchronous>, transform_indices = @transform_1, window_bounds = array<i64: 384, 8>}, {pipeline_mode = #tpu.pipeline_mode<synchronous>, transform_indices = @transform_2, window_bounds = array<i64: 8, 384>}, {pipeline_mode = #tpu.pipeline_mode<synchronous>, transform_indices = @transform_3, window_bounds = array<i64: 1, 384>}, {transform_indices = @transform_4, window_bounds = array<i64: 16, 384>}]} {
    %c0 = arith.constant 0 : index
    %c0_0 = arith.constant 0 : index
    %0 = vector.load %arg1[%c0, %c0_0] : memref<16x384xf32, #tpu.memory_space<vmem>>, vector<16x384xf32>
    %c0_1 = arith.constant 0 : index
    %c0_2 = arith.constant 0 : index
    %1 = vector.load %arg2[%c0_1, %c0_2] : memref<384x8xbf16, #tpu.memory_space<vmem>>, vector<384x8xbf16>
    %c0_3 = arith.constant 0 : index
    %c0_4 = arith.constant 0 : index
    %2 = vector.load %arg3[%c0_3, %c0_4] : memref<8x384xbf16, #tpu.memory_space<vmem>>, vector<8x384xbf16>
    %c0_5 = arith.constant 0 : index
    %c0_6 = arith.constant 0 : index
    %3 = vector.load %arg4[%c0_5, %c0_6] : memref<1x384xf32, #tpu.memory_space<vmem>>, vector<1x384xf32>
    %4 = arith.truncf %0 : vector<16x384xf32> to vector<16x384xbf16>
    %5 = arith.extf %4 : vector<16x384xbf16> to vector<16x384xf32>
    %6 = arith.subf %0, %5 : vector<16x384xf32>
    %7 = arith.truncf %6 : vector<16x384xf32> to vector<16x384xbf16>
    %cst = arith.constant dense<0.000000e+00> : vector<16x8xf32>
    %8 = tpu.matmul %4, %1, %cst {dimension_numbers = #tpu.dot_dimension_numbers<[1], [0], [0], [1], [0, 0, 1, 1], [], []>} : vector<16x384xbf16>, vector<384x8xbf16>, vector<16x8xf32> -> vector<16x8xf32>
    %cst_7 = arith.constant dense<0.000000e+00> : vector<16x8xf32>
    %9 = tpu.matmul %7, %1, %cst_7 {dimension_numbers = #tpu.dot_dimension_numbers<[1], [0], [0], [1], [0, 0, 1, 1], [], []>} : vector<16x384xbf16>, vector<384x8xbf16>, vector<16x8xf32> -> vector<16x8xf32>
    %10 = arith.addf %8, %9 : vector<16x8xf32>
    %cst_8 = arith.constant 0.020833334 : f32
    %11 = vector.broadcast %cst_8 : f32 to vector<16x8xf32>
    %12 = arith.mulf %10, %11 : vector<16x8xf32>
    %13 = arith.truncf %12 : vector<16x8xf32> to vector<16x8xbf16>
    %14 = arith.extf %13 : vector<16x8xbf16> to vector<16x8xf32>
    %15 = arith.subf %12, %14 : vector<16x8xf32>
    %16 = arith.truncf %15 : vector<16x8xf32> to vector<16x8xbf16>
    %cst_9 = arith.constant dense<0.000000e+00> : vector<16x384xf32>
    %17 = tpu.matmul %13, %2, %cst_9 {dimension_numbers = #tpu.dot_dimension_numbers<[1], [0], [0], [1], [0, 0, 1, 1], [], []>} : vector<16x8xbf16>, vector<8x384xbf16>, vector<16x384xf32> -> vector<16x384xf32>
    %cst_10 = arith.constant dense<0.000000e+00> : vector<16x384xf32>
    %18 = tpu.matmul %16, %2, %cst_10 {dimension_numbers = #tpu.dot_dimension_numbers<[1], [0], [0], [1], [0, 0, 1, 1], [], []>} : vector<16x8xbf16>, vector<8x384xbf16>, vector<16x384xf32> -> vector<16x384xf32>
    %19 = arith.addf %17, %18 : vector<16x384xf32>
    %20 = arith.subf %0, %19 : vector<16x384xf32>
    %21 = arith.mulf %20, %20 : vector<16x384xf32>
    %22 = arith.truncf %21 : vector<16x384xf32> to vector<16x384xbf16>
    %23 = arith.extf %22 : vector<16x384xbf16> to vector<16x384xf32>
    %24 = arith.subf %21, %23 : vector<16x384xf32>
    %25 = arith.truncf %24 : vector<16x384xf32> to vector<16x384xbf16>
    %cst_11 = arith.constant dense<0.000000e+00> : vector<16x8xf32>
    %26 = tpu.matmul %22, %1, %cst_11 {dimension_numbers = #tpu.dot_dimension_numbers<[1], [0], [0], [1], [0, 0, 1, 1], [], []>} : vector<16x384xbf16>, vector<384x8xbf16>, vector<16x8xf32> -> vector<16x8xf32>
    %cst_12 = arith.constant dense<0.000000e+00> : vector<16x8xf32>
    %27 = tpu.matmul %25, %1, %cst_12 {dimension_numbers = #tpu.dot_dimension_numbers<[1], [0], [0], [1], [0, 0, 1, 1], [], []>} : vector<16x384xbf16>, vector<384x8xbf16>, vector<16x8xf32> -> vector<16x8xf32>
    %28 = arith.addf %26, %27 : vector<16x8xf32>
    %cst_13 = arith.constant 0.020833334 : f32
    %29 = vector.broadcast %cst_13 : f32 to vector<16x8xf32>
    %30 = arith.mulf %28, %29 : vector<16x8xf32>
    %cst_14 = arith.constant 9.99999974E-6 : f32
    %31 = vector.broadcast %cst_14 : f32 to vector<16x8xf32>
    %32 = arith.addf %30, %31 : vector<16x8xf32>
    %33 = math.rsqrt %32 : vector<16x8xf32>
    %34 = arith.truncf %33 : vector<16x8xf32> to vector<16x8xbf16>
    %35 = arith.extf %34 : vector<16x8xbf16> to vector<16x8xf32>
    %36 = arith.subf %33, %35 : vector<16x8xf32>
    %37 = arith.truncf %36 : vector<16x8xf32> to vector<16x8xbf16>
    %cst_15 = arith.constant dense<0.000000e+00> : vector<16x384xf32>
    %38 = tpu.matmul %34, %2, %cst_15 {dimension_numbers = #tpu.dot_dimension_numbers<[1], [0], [0], [1], [0, 0, 1, 1], [], []>} : vector<16x8xbf16>, vector<8x384xbf16>, vector<16x384xf32> -> vector<16x384xf32>
    %cst_16 = arith.constant dense<0.000000e+00> : vector<16x384xf32>
    %39 = tpu.matmul %37, %2, %cst_16 {dimension_numbers = #tpu.dot_dimension_numbers<[1], [0], [0], [1], [0, 0, 1, 1], [], []>} : vector<16x8xbf16>, vector<8x384xbf16>, vector<16x384xf32> -> vector<16x384xf32>
    %40 = arith.addf %38, %39 : vector<16x384xf32>
    %41 = vector.broadcast %3 : vector<1x384xf32> to vector<16x384xf32>
    %42 = arith.mulf %40, %41 : vector<16x384xf32>
    %43 = arith.mulf %0, %42 : vector<16x384xf32>
    %c0_17 = arith.constant 0 : index
    %c0_18 = arith.constant 0 : index
    %44 = vector.load %arg5[%c0_17, %c0_18] : memref<16x384xf32, #tpu.memory_space<vmem>>, vector<16x384xf32>
    tpu.vector_store %arg5[%c0_17, %c0_18], %43 {strides = array<i32>} : memref<16x384xf32, #tpu.memory_space<vmem>>, vector<16x384xf32>,
    return
  }
  func.func @transform_0(%arg0: i32) -> (i32, i32) {
    %c0_i32 = arith.constant 0 : i32
    %c0_i32_0 = arith.constant 0 : i32
    return %arg0, %c0_i32 : i32, i32
  }
  func.func @transform_1(%arg0: i32) -> (i32, i32) {
    %c0_i32 = arith.constant 0 : i32
    %c0_i32_0 = arith.constant 0 : i32
    %c0_i32_1 = arith.constant 0 : i32
    return %c0_i32, %c0_i32_0 : i32, i32
  }
  func.func @transform_2(%arg0: i32) -> (i32, i32) {
    %c0_i32 = arith.constant 0 : i32
    %c0_i32_0 = arith.constant 0 : i32
    %c0_i32_1 = arith.constant 0 : i32
    return %c0_i32, %c0_i32_0 : i32, i32
  }
  func.func @transform_3(%arg0: i32) -> (i32, i32) {
    %c0_i32 = arith.constant 0 : i32
    %c0_i32_0 = arith.constant 0 : i32
    %c0_i32_1 = arith.constant 0 : i32
    return %c0_i32, %c0_i32_0 : i32, i32
  }
  func.func @transform_4(%arg0: i32) -> (i32, i32) {
    %c0_i32 = arith.constant 0 : i32
    %c0_i32_0 = arith.constant 0 : i32
    return %arg0, %c0_i32 : i32, i32
  }
}

</mosaic_0001>

<bundles_post_ra>
// kernel: tpu_custom_call.1
= control target key start
LH: loop header
LB: loop body
LE: loop exit
PB: predicated region body
PF: predicated region fallthrough
CT: control target
= control target key end

     0   :  { %v1367_v1 = vmov 0.0   ;;  %vm1368_vm0 = vmmov 0   ;;  %s1778_s0 = inlined_call_operand.vmem [shape: f32[16,384], index: 0, kind: input, shape index: {}]   ;;  %s1779_s1 = inlined_call_operand.vmem [shape: bf16[384,8], index: 1, kind: input, shape index: {}]   ;;  %s1780_s2 = inlined_call_operand.vmem [shape: bf16[8,384], index: 2, kind: input, shape index: {}]   ;;  %s1781_s3 = inlined_call_operand.vmem [shape: f32[1,384], index: 3, kind: input, shape index: {}]   ;;  %s1782_s4 = inlined_call_operand.hbm [shape: f32[16,384], index: 4, kind: output, shape index: {}]  }
   0x1   :  { %v1401_v0 = vld [vmem:[%s1779_s1 + $0x78] sm:$0xff]   ;;  %1204 = vmatprep.subr.bf16.mxu1 %v1367_v1  ;;  %1220 = vmatprep.mubr.msk.bf16.mxu1 %vm1368_vm0, %v1367_v1  ;;  %v1421_v4 = vld [vmem:[%s1779_s1 + $0x70] sm:$0xff]   ;;  %v1439_v7 = vld [vmem:[%s1779_s1 + $0x68] sm:$0xff]  }
   0x2   :  { %v1407_v2 = vld [vmem:[%s1779_s1 + $0x38] sm:$0xff]   ;;  %1072 = vmatprep.subr.bf16.mxu0 %v1401_v0  ;;  %v1427_v5 = vld [vmem:[%s1779_s1 + $0x30] sm:$0xff]   ;;  %v1445_v8 = vld [vmem:[%s1779_s1 + $0x28] sm:$0xff]  }
   0x3   :  { %v1413_v3 = vld [vmem:[%s1779_s1 + $0xb8] sm:$0xff]   ;;  %1073 = vmatpush3.bf16.msra.mxu0 %v1407_v2  ;;  %v1434_v6 = vld [vmem:[%s1779_s1 + $0xb0] sm:$0xff]   ;;  %v1452_v9 = vld [vmem:[%s1779_s1 + $0xa8] sm:$0xff]  }
   0x4   :  { %1205 = vmatpush3.bf16.msra.mxu1 %v1413_v3  ;;  %1074 = vmatprep.subr.bf16.mxu0 %v1421_v4  ;;  %v1458_v10 = vld [vmem:[%s1779_s1 + $0x60] sm:$0xff]   ;;  %v1476_v13 = vld [vmem:[%s1779_s1 + $0x58] sm:$0xff]   ;;  %v1495_v16 = vld [vmem:[%s1779_s1 + $0x50] sm:$0xff]  }
   0x5   :  { %1206 = vmatprep.subr.bf16.mxu1 %v1367_v1  ;;  %v1463_v11 = vld [vmem:[%s1779_s1 + $0x20] sm:$0xff]   ;;  %v1482_v14 = vld [vmem:[%s1779_s1 + $0x18] sm:$0xff]   ;;  %v1501_v17 = vld [vmem:[%s1779_s1 + $0x10] sm:$0xff]  }
   0x6   :  { %v1469_v12 = vld [vmem:[%s1779_s1 + $0xa0] sm:$0xff]   ;;  %v1488_v15 = vld [vmem:[%s1779_s1 + $0x98] sm:$0xff]   ;;  %v1507_v18 = vld [vmem:[%s1779_s1 + $0x90] sm:$0xff]  }
   0x7   :  { %1075 = vmatpush3.bf16.msra.mxu0 %v1427_v5  ;;  %v1514_v19 = vld [vmem:[%s1779_s1 + $0x48] sm:$0xff]   ;;  %v1531_v22 = vld [vmem:[%s1779_s1 + $0x40] sm:$0xff]   ;;  %v1556_v27 = vld [vmem:[%s1778_s0 + $0x18] sm:$0xff] }
   0x8   :  { %1207 = vmatpush3.bf16.msra.mxu1 %v1434_v6  ;;  %1076 = vmatprep.subr.bf16.mxu0 %v1439_v7  ;;  %v1520_v20 = vld [vmem:[%s1779_s1 + $0x8] sm:$0xff]   ;;  %v1543_v24 = vld [vmem:[%s1778_s0 + $0x20] sm:$0xff]  ;;  %v1561_v28 = vld [vmem:[%s1778_s0 + $0x10] sm:$0xff] }
   0x9   :  { %1208 = vmatprep.subr.bf16.mxu1 %v1367_v1  ;;  %v1525_v21 = vld [vmem:[%s1779_s1 + $0x88] sm:$0xff]   ;;  %v1548_v25 = vld [vmem:[%s1778_s0] sm:$0xff] }
   0xa   :  { %v1538_v23 = vld [vmem:[%s1778_s0 + $0x8] sm:$0xff]  ;;  %v1570_v30 = vpack.c.bf16 %v1556_v27, %v1548_v25 }
   0xb   :  { %1077 = vmatpush3.bf16.msra.mxu0 %v1445_v8  ;;  %v77_v26 = vpack.c.bf16 %v1543_v24, %v1538_v23  ;;  %v1566_v29 = vld [vmem:[%s1778_s0 + $0x28] sm:$0xff] }
   0xc   :  { %1209 = vmatpush3.bf16.msra.mxu1 %v1452_v9  ;;  %1078 = vmatprep.subr.bf16.mxu0 %v1458_v10  ;;  %v1574_v31 = vpack.c.bf16 %v1566_v29, %v1561_v28 }
   0xd   :  { %1210 = vmatprep.subr.bf16.mxu1 %v1367_v1 }
   0xf   :  { %1079 = vmatpush3.bf16.msra.mxu0 %v1463_v11 }
  0x10   :  { %1211 = vmatpush3.bf16.msra.mxu1 %v1469_v12  ;;  %1080 = vmatprep.subr.bf16.mxu0 %v1476_v13 }
  0x11   :  { %1212 = vmatprep.subr.bf16.mxu1 %v1367_v1 }
  0x13   :  { %1081 = vmatpush3.bf16.msra.mxu0 %v1482_v14 }
  0x14   :  { %1213 = vmatpush3.bf16.msra.mxu1 %v1488_v15  ;;  %1082 = vmatprep.subr.bf16.mxu0 %v1495_v16 }
  0x15   :  { %1214 = vmatprep.subr.bf16.mxu1 %v1367_v1 }
  0x17   :  { %1083 = vmatpush3.bf16.msra.mxu0 %v1501_v17 }
  0x18   :  { %1215 = vmatpush3.bf16.msra.mxu1 %v1507_v18  ;;  %1084 = vmatprep.subr.bf16.mxu0 %v1514_v19 }
  0x19   :  { %1216 = vmatprep.subr.bf16.mxu1 %v1367_v1 }
  0x1a   :  { %9 = vsyncpa [#allocation3], 0  ;;  %v1580_v32 = vld [vmem:[%s1779_s1] sm:$0xff]   ;;  %v80_v33 = vunpack.c.l.bf16 %v77_v26  ;;  %v83_v34 = vunpack.c.h.bf16 %v77_v26  ;;  %v79_v36 = vunpack.c.l.bf16 %v1570_v30  ;;  %v82_v37 = vunpack.c.h.bf16 %v1570_v30  ;;  %v1340_v52 = vld [vmem:[%s1780_s2 + $0x8] ss:$0 sps:$4 sm:$0xff]  }
  0x1b   :  { %1085 = vmatpush3.bf16.msra.mxu0 %v1520_v20  ;;  %v1587_v35 = vld [vmem:[%s1779_s1 + $0x80] sm:$0xff]   ;;  %v81_v38 = vunpack.c.l.bf16 %v1574_v31  ;;  %v84_v39 = vunpack.c.h.bf16 %v1574_v31  ;;  %vm422_vm1 = vcmask 1043456   ;;  %v1369_v55 = vmov 0  }
  0x1c   :  { %1217 = vmatpush3.bf16.msra.mxu1 %v1525_v21  ;;  %1086 = vmatprep.subr.bf16.mxu0 %v1531_v22  ;;  %v86_v40 = vsub.f32 %v1538_v23, %v80_v33  ;;  %v89_v41 = vsub.f32 %v1543_v24, %v83_v34  ;;  %v85_v42 = vsub.f32 %v1548_v25, %v79_v36  ;;  %v73_v49 = vld [vmem:[%s1780_s2] sm:$0xff]  ;;  %v1655_v54 = vsel %vm422_vm1, %v1340_v52, 0 }
  0x1d   :  { %1218 = vmatprep.subr.bf16.mxu1 %v1367_v1  ;;  %v88_v43 = vsub.f32 %v1556_v27, %v82_v37  ;;  %v87_v44 = vsub.f32 %v1561_v28, %v81_v38  ;;  %v90_v45 = vsub.f32 %v1566_v29, %v84_v39  ;;  %v1644_v50 = vcombine.high %v73_v49, %v73_v49 }
  0x1e   :  { %v92_v46 = vpack.c.bf16 %v89_v41, %v86_v40  ;;  %v1057_v51 = vcombine.low %v73_v49, %v73_v49  ;;  %vm418_vm2 = vcmask 64512  }
  0x1f   :  { %1087 = vmatpush3.bf16.msra.mxu0 %v1580_v32  ;;  %v91_v47 = vpack.c.bf16 %v88_v43, %v85_v42  ;;  %v93_v48 = vpack.c.bf16 %v90_v45, %v87_v44 }
  0x20   :  { %1219 = vmatpush3.bf16.msra.mxu1 %v1587_v35  ;;  %1103 = vmatprep.subr.bf16.mxu0 %v1401_v0  ;;  %v1652_v53 = vsel %vm422_vm1, %v1057_v51, 0 }
  0x21   :  { %270 = vmatprep.mubr.bf16.mxu0 %v92_v46  ;;  %1224 = vmatprep.subr.bf16.mxu1 %v1367_v1 }
  0x22   :  { %271 = vmatmul.mubr.bf16.vlgmr.msra.gmra.mxu0 %v91_v47 }
  0x23   :  { %1221 = vmatmul.mubr.bf16.vlgmr.msra.gmra.mxu1 %v93_v48  ;;  %1104 = vmatpush3.bf16.msra.mxu0 %v1407_v2 }
  0x24   :  { %1225 = vmatpush3.bf16.msra.mxu1 %v1413_v3  ;;  %1105 = vmatprep.subr.bf16.mxu0 %v1421_v4 }
  0x25   :  { %1226 = vmatprep.subr.bf16.mxu1 %v1367_v1  ;;  %352 = vmatprep.mubr.bf16.mxu0 %v77_v26 }
  0x26   :  { %1240 = vmatprep.mubr.msk.bf16.mxu1 %vm1368_vm0, %v1367_v1 }
  0x27   :  { %1106 = vmatpush3.bf16.msra.mxu0 %v1427_v5 }
  0x28   :  { %1227 = vmatpush3.bf16.msra.mxu1 %v1434_v6  ;;  %1107 = vmatprep.subr.bf16.mxu0 %v1439_v7 }
  0x29   :  { %1228 = vmatprep.subr.bf16.mxu1 %v1367_v1 }
  0x2b   :  { %1108 = vmatpush3.bf16.msra.mxu0 %v1445_v8 }
  0x2c   :  { %1229 = vmatpush3.bf16.msra.mxu1 %v1452_v9  ;;  %1109 = vmatprep.subr.bf16.mxu0 %v1458_v10 }
  0x2d   :  { %1230 = vmatprep.subr.bf16.mxu1 %v1367_v1 }
  0x2f   :  { %1110 = vmatpush3.bf16.msra.mxu0 %v1463_v11 }
  0x30   :  { %1231 = vmatpush3.bf16.msra.mxu1 %v1469_v12  ;;  %1111 = vmatprep.subr.bf16.mxu0 %v1476_v13 }
  0x31   :  { %1232 = vmatprep.subr.bf16.mxu1 %v1367_v1 }
  0x33   :  { %1112 = vmatpush3.bf16.msra.mxu0 %v1482_v14 }
  0x34   :  { %1233 = vmatpush3.bf16.msra.mxu1 %v1488_v15  ;;  %1113 = vmatprep.subr.bf16.mxu0 %v1495_v16 }
  0x35   :  { %1234 = vmatprep.subr.bf16.mxu1 %v1367_v1 }
  0x37   :  { %1114 = vmatpush3.bf16.msra.mxu0 %v1501_v17 }
  0x38   :  { %1235 = vmatpush3.bf16.msra.mxu1 %v1507_v18  ;;  %1115 = vmatprep.subr.bf16.mxu0 %v1514_v19 }
  0x39   :  { %1236 = vmatprep.subr.bf16.mxu1 %v1367_v1 }
  0x3b   :  { %1116 = vmatpush3.bf16.msra.mxu0 %v1520_v20 }
  0x3c   :  { %1237 = vmatpush3.bf16.msra.mxu1 %v1525_v21  ;;  %1117 = vmatprep.subr.bf16.mxu0 %v1531_v22 }
  0x3d   :  { %1238 = vmatprep.subr.bf16.mxu1 %v1367_v1 }
  0x3f   :  { %1118 = vmatpush3.bf16.msra.mxu0 %v1580_v32 }
  0x40   :  { %1239 = vmatpush3.bf16.msra.mxu1 %v1587_v35  ;;  %1060 = vmatprep.subr.msk.bf16.mxu0 %vm422_vm1, %v1644_v50 }
  0x41   :  { %1244 = vmatprep.subr.bf16.mxu1 %v1367_v1 }
  0x42   :  { %353 = vmatmul.mubr.bf16.vlgmr.msra.gmra.mxu0 %v1570_v30 }
  0x43   :  { %1241 = vmatmul.mubr.bf16.vlgmr.msra.gmra.mxu1 %v1574_v31  ;;  %447 = vmatpush1.bf16.msra.mxu0 %v1652_v53 }
  0x44   :  { %1246 = vmatprep.mubr.msk.bf16.mxu1 %vm1368_vm0, %v1367_v1  ;;  %1245 = vmatpush3.bf16.msra.mxu1 %v1655_v54 }
  0x45   :  { %464 = vmatprep.mubr.bf16.mxu0 %v1369_v55  ;;  %1063 = vmatprep.subr.msk.bf16.mxu0 %vm422_vm1, %v1644_v50 }
  0x46   :  { %1250 = vmatprep.subr.bf16.mxu1 %v1367_v1 }
  0xe2   :  { %v1088_v60 = vpop.f32.mrf.mxu0 }
  0xe3   :  { %v313_v56 = vpop.f32.mrf.mxu1 }
  0xe4   :  { %v1089_v61 = vpop.f32.mrf.mxu0 }
  0xe5   :  { %v1222_v57 = vpop.f32.mrf.mxu1  ;;  %v1090_v26 = vadd.f32 %v1089_v61, %v1088_v60 }
  0xe6   :  { %v1091_v62 = vpop.f32.mrf.mxu0 }
  0xe7   :  { %v316_v58 = vpop.f32.mrf.mxu1  ;;  %v314_v34 = vadd.f32 %v1090_v26, %v313_v56 }
  0xe8   :  { %v1092_v63 = vpop.f32.mrf.mxu0 }
  0xe9   :  { %v1223_v59 = vpop.f32.mrf.mxu1  ;;  %v1093_v36 = vadd.f32 %v1092_v63, %v1091_v62 }
  0xeb   :  { %v317_v43 = vadd.f32 %v1093_v36, %v316_v58 }
 0x102   :  { %v1119_v30 = vpop.f32.mrf.mxu0 }
 0x103   :  { %v395_v31 = vpop.f32.mrf.mxu1 }
 0x104   :  { %v1120_v33 = vpop.f32.mrf.mxu0 }
 0x105   :  { %v1121_v37 = vadd.f32 %v1120_v33, %v1119_v30  ;;  %v1242_v38 = vpop.f32.mrf.mxu1 }
 0x106   :  { %v1122_v39 = vpop.f32.mrf.mxu0 }
 0x107   :  { %v355_v40 = vadd.f32 %v1121_v37, %v314_v34  ;;  %v398_v41 = vpop.f32.mrf.mxu1 }
 0x108   :  { %v1123_v42 = vpop.f32.mrf.mxu0 }
 0x109   :  { %v1124_v44 = vadd.f32 %v1123_v42, %v1122_v39  ;;  %v1243_v45 = vpop.f32.mrf.mxu1  ;;  %v396_v46 = vadd.f32 %v395_v31, %v355_v40 }
 0x10b   :  { %v358_v47 = vadd.f32 %v1124_v44, %v317_v43  ;;  %v402_v49 = vmul.f32 0.020833334, %v396_v46 }
 0x10d   :  { %v399_v48 = vadd.f32 %v398_v41, %v358_v47 }
 0x10f   :  { %v403_v51 = vmul.f32 0.020833334, %v399_v48 }
 0x111   :  { %v404_v52 = vpack.c.bf16 %v403_v51, %v402_v49 }
 0x113   :  { %v405_v57 = vunpack.c.l.bf16 %v404_v52  ;;  %v406_v59 = vunpack.c.h.bf16 %v404_v52 }
 0x115   :  { %v407_v60 = vsub.f32 %v402_v49, %v405_v57  ;;  %v408_v56 = vsub.f32 %v403_v51, %v406_v59 }
 0x117   :  { %v409_v61 = vpack.c.bf16 %v408_v56, %v407_v60 }
 0x119   :  { %1061 = vmatmul.mubr.msk.bf16.vlgmr.msra.gmra.mxu0 %vm418_vm2, %v409_v61  ;;  %1247 = vmatmul.mubr.msk.bf16.vlgmr.msra.gmra.mxu1 %vm418_vm2, %v409_v61 }
 0x11a   :  { %534 = vmatpush1.bf16.msra.mxu0 %v1652_v53  ;;  %1251 = vmatpush3.bf16.msra.mxu1 %v1655_v54 }
 0x11b   :  { %551 = vmatprep.mubr.bf16.mxu0 %v1369_v55  ;;  %1252 = vmatprep.mubr.msk.bf16.mxu1 %vm1368_vm0, %v1367_v1 }
 0x11c   :  { %1256 = vmatprep.subr.bf16.mxu1 %v1367_v1  ;;  %1138 = vmatprep.subr.bf16.mxu0 %v1401_v0 }
 0x121   :  { %1064 = vmatmul.mubr.msk.bf16.vlgmr.msra.gmra.mxu0 %vm418_vm2, %v404_v52  ;;  %1253 = vmatmul.mubr.msk.bf16.vlgmr.msra.gmra.mxu1 %vm418_vm2, %v404_v52 }
 0x122   :  { %1257 = vmatpush3.bf16.msra.mxu1 %v1413_v3  ;;  %1139 = vmatpush3.bf16.msra.mxu0 %v1407_v2 }
 0x123   :  { %1258 = vmatprep.subr.bf16.mxu1 %v1367_v1  ;;  %1140 = vmatprep.subr.bf16.mxu0 %v1421_v4 }
 0x124   :  { %1272 = vmatprep.mubr.msk.bf16.mxu1 %vm1368_vm0, %v1367_v1 }
 0x126   :  { %1259 = vmatpush3.bf16.msra.mxu1 %v1434_v6  ;;  %1141 = vmatpush3.bf16.msra.mxu0 %v1427_v5 }
 0x127   :  { %1260 = vmatprep.subr.bf16.mxu1 %v1367_v1  ;;  %1142 = vmatprep.subr.bf16.mxu0 %v1439_v7 }
 0x12a   :  { %1261 = vmatpush3.bf16.msra.mxu1 %v1452_v9  ;;  %1143 = vmatpush3.bf16.msra.mxu0 %v1445_v8 }
 0x12b   :  { %1262 = vmatprep.subr.bf16.mxu1 %v1367_v1  ;;  %1144 = vmatprep.subr.bf16.mxu0 %v1458_v10 }
 0x12e   :  { %1263 = vmatpush3.bf16.msra.mxu1 %v1469_v12  ;;  %1145 = vmatpush3.bf16.msra.mxu0 %v1463_v11 }
 0x12f   :  { %1264 = vmatprep.subr.bf16.mxu1 %v1367_v1  ;;  %1146 = vmatprep.subr.bf16.mxu0 %v1476_v13 }
 0x132   :  { %1265 = vmatpush3.bf16.msra.mxu1 %v1488_v15  ;;  %1147 = vmatpush3.bf16.msra.mxu0 %v1482_v14 }
 0x133   :  { %1266 = vmatprep.subr.bf16.mxu1 %v1367_v1  ;;  %1148 = vmatprep.subr.bf16.mxu0 %v1495_v16 }
 0x136   :  { %1267 = vmatpush3.bf16.msra.mxu1 %v1507_v18  ;;  %1149 = vmatpush3.bf16.msra.mxu0 %v1501_v17 }
 0x137   :  { %1268 = vmatprep.subr.bf16.mxu1 %v1367_v1  ;;  %1150 = vmatprep.subr.bf16.mxu0 %v1514_v19 }
 0x13a   :  { %1269 = vmatpush3.bf16.msra.mxu1 %v1525_v21  ;;  %1151 = vmatpush3.bf16.msra.mxu0 %v1520_v20 }
 0x13b   :  { %1270 = vmatprep.subr.bf16.mxu1 %v1367_v1  ;;  %1152 = vmatprep.subr.bf16.mxu0 %v1531_v22 }
 0x13e   :  { %1271 = vmatpush3.bf16.msra.mxu1 %v1587_v35  ;;  %1153 = vmatpush3.bf16.msra.mxu0 %v1580_v32 }
 0x13f   :  { %1276 = vmatprep.subr.bf16.mxu1 %v1367_v1  ;;  %1169 = vmatprep.subr.bf16.mxu0 %v1401_v0 }
 0x1d9   :  { %v466_v58 = vpop.f32.mrf.mxu0  ;;  %v509_v62 = vpop.f32.mrf.mxu1 }
 0x1db   :  { %v468_v63 = vpop.f32.mrf.mxu0  ;;  %v1248_v26 = vpop.f32.mrf.mxu1 }
 0x1dd   :  { %v470_v30 = vpop.f32.mrf.mxu0  ;;  %v512_v31 = vpop.f32.mrf.mxu1 }
 0x1df   :  { %v472_v33 = vpop.f32.mrf.mxu0  ;;  %v1249_v34 = vpop.f32.mrf.mxu1 }
 0x1e1   :  { %v553_v36 = vpop.f32.mrf.mxu0  ;;  %v596_v37 = vpop.f32.mrf.mxu1 }
 0x1e2   :  { %v554_v38 = vadd.f32 %v553_v36, %v466_v58  ;;  %v597_v39 = vadd.f32 %v596_v37, %v509_v62 }
 0x1e3   :  { %v555_v40 = vpop.f32.mrf.mxu0  ;;  %v1254_v41 = vpop.f32.mrf.mxu1 }
 0x1e4   :  { %v556_v42 = vadd.f32 %v555_v40, %v468_v63  ;;  %v603_v45 = vsub.f32 %v1548_v25, %v554_v38  ;;  %v605_v46 = vsub.f32 %v1561_v28, %v597_v39 }
 0x1e5   :  { %v557_v43 = vpop.f32.mrf.mxu0  ;;  %v599_v44 = vpop.f32.mrf.mxu1 }
 0x1e6   :  { %v558_v0 = vadd.f32 %v557_v43, %v470_v30  ;;  %v600_v47 = vadd.f32 %v599_v44, %v512_v31  ;;  %v604_v51 = vsub.f32 %v1538_v23, %v556_v42  ;;  %v609_v60 = vmul.f32 %v603_v45, %v603_v45 }
 0x1e7   :  { %v559_v48 = vpop.f32.mrf.mxu0  ;;  %v1255_v49 = vpop.f32.mrf.mxu1  ;;  %v611_v58 = vmul.f32 %v605_v46, %v605_v46 }
 0x1e8   :  { %v606_v52 = vsub.f32 %v1556_v27, %v558_v0  ;;  %v560_v57 = vadd.f32 %v559_v48, %v472_v33  ;;  %v608_v59 = vsub.f32 %v1566_v29, %v600_v47  ;;  %v610_v63 = vmul.f32 %v604_v51, %v604_v51 }
 0x1ea   :  { %v612_v56 = vmul.f32 %v606_v52, %v606_v52  ;;  %v607_v61 = vsub.f32 %v1543_v24, %v560_v57  ;;  %v614_v62 = vmul.f32 %v608_v59, %v608_v59 }
 0x1ec   :  { %v615_v26 = vpack.c.bf16 %v612_v56, %v609_v60  ;;  %v613_v30 = vmul.f32 %v607_v61, %v607_v61  ;;  %v617_v34 = vpack.c.bf16 %v614_v62, %v611_v58 }
 0x1ee   :  { %v618_v31 = vunpack.c.l.bf16 %v615_v26  ;;  %v621_v36 = vunpack.c.h.bf16 %v615_v26  ;;  %v616_v37 = vpack.c.bf16 %v613_v30, %v610_v63  ;;  %v620_v38 = vunpack.c.l.bf16 %v617_v34 }
 0x1ef   :  { %v623_v39 = vunpack.c.h.bf16 %v617_v34 }
 0x1f0   :  { %v622_v40 = vunpack.c.h.bf16 %v616_v37  ;;  %v619_v41 = vunpack.c.l.bf16 %v616_v37  ;;  %v624_v33 = vsub.f32 %v609_v60, %v618_v31  ;;  %v627_v42 = vsub.f32 %v612_v56, %v621_v36 }
 0x1f1   :  { %v626_v43 = vsub.f32 %v611_v58, %v620_v38  ;;  %v629_v44 = vsub.f32 %v614_v62, %v623_v39  ;;  %v984_v31 = vlaneseq }
 0x1f2   :  { %v628_v45 = vsub.f32 %v613_v30, %v622_v40  ;;  %v625_v0 = vsub.f32 %v610_v63, %v619_v41  ;;  %v630_v48 = vpack.c.bf16 %v627_v42, %v624_v33 }
 0x1f3   :  { %v632_v47 = vpack.c.bf16 %v629_v44, %v626_v43  ;;  %v985_v36 = vshrl.u32 %v984_v31, 7 }
 0x1f4   :  { %v631_v46 = vpack.c.bf16 %v628_v45, %v625_v0 }
 0x1f5   :  { %1273 = vmatmul.mubr.bf16.vlgmr.msra.gmra.mxu1 %v632_v47  ;;  %v986_v41 = vsub.s32 0, %v985_v36  ;;  %v994_v33 = vsub.s32 2, %v985_v36 }
 0x1f6   :  { %1277 = vmatpush3.bf16.msra.mxu1 %v1413_v3  ;;  %665 = vmatprep.mubr.bf16.mxu0 %v631_v46 }
 0x1f7   :  { %666 = vmatmul.mubr.bf16.vlgmr.msra.gmra.mxu0 %v630_v48  ;;  %1278 = vmatprep.subr.bf16.mxu1 %v1367_v1 }
 0x1f8   :  { %1170 = vmatpush3.bf16.msra.mxu0 %v1407_v2  ;;  %747 = vmatprep.mubr.bf16.mxu0 %v616_v37 }
 0x1f9   :  { %1171 = vmatprep.subr.bf16.mxu0 %v1421_v4  ;;  %1292 = vmatprep.mubr.msk.bf16.mxu1 %vm1368_vm0, %v1367_v1 }
 0x1fa   :  { %1279 = vmatpush3.bf16.msra.mxu1 %v1434_v6 }
 0x1fb   :  { %1280 = vmatprep.subr.bf16.mxu1 %v1367_v1 }
 0x1fc   :  { %1172 = vmatpush3.bf16.msra.mxu0 %v1427_v5 }
 0x1fd   :  { %1173 = vmatprep.subr.bf16.mxu0 %v1439_v7 }
 0x1fe   :  { %1281 = vmatpush3.bf16.msra.mxu1 %v1452_v9 }
 0x1ff   :  { %1282 = vmatprep.subr.bf16.mxu1 %v1367_v1 }
 0x200   :  { %1174 = vmatpush3.bf16.msra.mxu0 %v1445_v8 }
 0x201   :  { %1175 = vmatprep.subr.bf16.mxu0 %v1458_v10 }
 0x202   :  { %1283 = vmatpush3.bf16.msra.mxu1 %v1469_v12 }
 0x203   :  { %1284 = vmatprep.subr.bf16.mxu1 %v1367_v1 }
 0x204   :  { %1176 = vmatpush3.bf16.msra.mxu0 %v1463_v11 }
 0x205   :  { %1177 = vmatprep.subr.bf16.mxu0 %v1476_v13 }
 0x206   :  { %1285 = vmatpush3.bf16.msra.mxu1 %v1488_v15 }
 0x207   :  { %1286 = vmatprep.subr.bf16.mxu1 %v1367_v1 }
 0x208   :  { %1178 = vmatpush3.bf16.msra.mxu0 %v1482_v14 }
 0x209   :  { %1179 = vmatprep.subr.bf16.mxu0 %v1495_v16 }
 0x20a   :  { %1287 = vmatpush3.bf16.msra.mxu1 %v1507_v18 }
 0x20b   :  { %1288 = vmatprep.subr.bf16.mxu1 %v1367_v1 }
 0x20c   :  { %1180 = vmatpush3.bf16.msra.mxu0 %v1501_v17 }
 0x20d   :  { %1181 = vmatprep.subr.bf16.mxu0 %v1514_v19 }
 0x20e   :  { %1289 = vmatpush3.bf16.msra.mxu1 %v1525_v21 }
 0x20f   :  { %1290 = vmatprep.subr.bf16.mxu1 %v1367_v1 }
 0x210   :  { %1182 = vmatpush3.bf16.msra.mxu0 %v1520_v20 }
 0x211   :  { %1183 = vmatprep.subr.bf16.mxu0 %v1531_v22 }
 0x212   :  { %1291 = vmatpush3.bf16.msra.mxu1 %v1587_v35 }
 0x213   :  { %1296 = vmatprep.subr.bf16.mxu1 %v1367_v1 }
 0x214   :  { %1184 = vmatpush3.bf16.msra.mxu0 %v1580_v32 }
 0x215   :  { %1293 = vmatmul.mubr.bf16.vlgmr.msra.gmra.mxu1 %v617_v34  ;;  %1066 = vmatprep.subr.msk.bf16.mxu0 %vm422_vm1, %v1644_v50 }
 0x216   :  { %1297 = vmatpush3.bf16.msra.mxu1 %v1655_v54  ;;  %1298 = vmatprep.mubr.msk.bf16.mxu1 %vm1368_vm0, %v1367_v1 }
 0x217   :  { %748 = vmatmul.mubr.bf16.vlgmr.msra.gmra.mxu0 %v615_v26  ;;  %1302 = vmatprep.subr.bf16.mxu1 %v1367_v1 }
 0x218   :  { %827 = vmatpush1.bf16.msra.mxu0 %v1652_v53  ;;  %844 = vmatprep.mubr.bf16.mxu0 %v1369_v55 }
 0x219   :  { %1069 = vmatprep.subr.msk.bf16.mxu0 %vm422_vm1, %v1644_v50 }
 0x2b5   :  { %v708_v2 = vpop.f32.mrf.mxu1 }
 0x2b7   :  { %v1274_v3 = vpop.f32.mrf.mxu1  ;;  %v1154_v6 = vpop.f32.mrf.mxu0 }
 0x2b9   :  { %v711_v4 = vpop.f32.mrf.mxu1  ;;  %v1155_v7 = vpop.f32.mrf.mxu0 }
 0x2ba   :  { %v1156_v11 = vadd.f32 %v1155_v7, %v1154_v6 }
 0x2bb   :  { %v1275_v5 = vpop.f32.mrf.mxu1  ;;  %v1157_v8 = vpop.f32.mrf.mxu0 }
 0x2bc   :  { %v709_v16 = vadd.f32 %v1156_v11, %v708_v2 }
 0x2bd   :  { %v1158_v9 = vpop.f32.mrf.mxu0 }
 0x2be   :  { %v1159_v17 = vadd.f32 %v1158_v9, %v1157_v8 }
 0x2c0   :  { %v712_v32 = vadd.f32 %v1159_v17, %v711_v4 }
 0x2d5   :  { %v790_v10 = vpop.f32.mrf.mxu1 }
 0x2d7   :  { %v1294_v12 = vpop.f32.mrf.mxu1  ;;  %v1185_v13 = vpop.f32.mrf.mxu0 }
 0x2d9   :  { %v793_v14 = vpop.f32.mrf.mxu1  ;;  %v1186_v15 = vpop.f32.mrf.mxu0 }
 0x2da   :  { %v1187_v18 = vadd.f32 %v1186_v15, %v1185_v13 }
 0x2db   :  { %v1295_v19 = vpop.f32.mrf.mxu1  ;;  %v1188_v20 = vpop.f32.mrf.mxu0 }
 0x2dc   :  { %v750_v21 = vadd.f32 %v1187_v18, %v709_v16 }
 0x2dd   :  { %v1189_v22 = vpop.f32.mrf.mxu0 }
 0x2de   :  { %v791_v35 = vadd.f32 %v790_v10, %v750_v21  ;;  %v1190_v50 = vadd.f32 %v1189_v22, %v1188_v20 }
 0x2e0   :  { %v797_v49 = vmul.f32 0.020833334, %v791_v35  ;;  %v753_v51 = vadd.f32 %v1190_v50, %v712_v32 }
 0x2e2   :  { %v794_v52 = vadd.f32 %v793_v14, %v753_v51  ;;  %v799_v57 = vadd.f32 1e-05, %v797_v49 }
 0x2e4   :  { %v798_v59 = vmul.f32 0.020833334, %v794_v52  ;;  %1341 = vrsqrt.f32 %v799_v57 }
 0x2e6   :  { %v800_v60 = vadd.f32 1e-05, %v798_v59 }
 0x2e8   :  { %1343 = vrsqrt.f32 %v800_v60 }
 0x2f1   :  { %v1342_v56 = vpop.eup %1341 }
 0x2f5   :  { %v1344_v61 = vpop.eup %1343 }
 0x2f6   :  { %v803_v58 = vpack.c.bf16 %v1344_v61, %v1342_v56 }
 0x2f8   :  { %v804_v62 = vunpack.c.l.bf16 %v803_v58  ;;  %v805_v63 = vunpack.c.h.bf16 %v803_v58 }
 0x2fa   :  { %v806_v26 = vsub.f32 %v1342_v56, %v804_v62  ;;  %v807_v30 = vsub.f32 %v1344_v61, %v805_v63 }
 0x2fc   :  { %v808_v34 = vpack.c.bf16 %v807_v30, %v806_v26 }
 0x2fe   :  { %1067 = vmatmul.mubr.msk.bf16.vlgmr.msra.gmra.mxu0 %vm418_vm2, %v808_v34  ;;  %1299 = vmatmul.mubr.msk.bf16.vlgmr.msra.gmra.mxu1 %vm418_vm2, %v808_v34 }
 0x2ff   :  { %914 = vmatpush1.bf16.msra.mxu0 %v1652_v53  ;;  %1303 = vmatpush3.bf16.msra.mxu1 %v1655_v54  ;;  %v75_v54 = vld [vmem:[%s1781_s3] sm:$0x7]  ;;  %s1370_s3 = smov [#allocation2]  }
 0x300   :  { %931 = vmatprep.mubr.bf16.mxu0 %v1369_v55  ;;  %1304 = vmatprep.mubr.msk.bf16.mxu1 %vm1368_vm0, %v1367_v1  ;;  %v990_v55 = vsub.s32 1, %v985_v36  ;;  %v987_v44 = vrot.slane %v75_v54, %v986_v41  ;;  %v995_v45 = vrot.slane %v75_v54, %v994_v33  ;;  %s1022_s26 = sshll.u32 %s1370_s3, 4  ;;  %s1023_s26 = int_to_ptr.vmem [resolvable:$true] %s1022_s26 }
 0x301   :  { %s1345_s27 = scalar_lea.vmem %s1023_s26, 768  ;;  %p1350_p1 = scmp.lt.s32.totalorder %s1023_s26, %s1023_s26 }
 0x302   :  { %v991_v2 = vrot.slane %v75_v54, %v990_v55  ;;  %p1346_p0 = scmp.ne.s32.totalorder %s1023_s26, %s1345_s27  ;;  %p1351_p2 = scmp.lt.s32.totalorder %s1345_s27, %s1345_s27 }
 0x304   :  { %p1352_p3 = por %p1351_p2, %p1350_p1 }
 0x306   :  { %1070 = vmatmul.mubr.msk.bf16.vlgmr.msra.gmra.mxu0 %vm418_vm2, %v803_v58  ;;  %1305 = vmatmul.mubr.msk.bf16.vlgmr.msra.gmra.mxu1 %vm418_vm2, %v803_v58  ;;  %p1353_p4 = pnand %p1352_p3, %p1346_p0 }
 0x3be   :  { %v846_v37 = vpop.f32.mrf.mxu0  ;;  %v889_v38 = vpop.f32.mrf.mxu1 }
 0x3c0   :  { %v848_v39 = vpop.f32.mrf.mxu0  ;;  %v1300_v40 = vpop.f32.mrf.mxu1 }
 0x3c2   :  { %v850_v53 = vpop.f32.mrf.mxu0  ;;  %v892_v42 = vpop.f32.mrf.mxu1 }
 0x3c4   :  { %v852_v1 = vpop.f32.mrf.mxu0  ;;  %v1301_v43 = vpop.f32.mrf.mxu1 }
 0x3c6   :  { %v933_v0 = vpop.f32.mrf.mxu0  ;;  %v976_v47 = vpop.f32.mrf.mxu1 }
 0x3c7   :  { %v934_v46 = vadd.f32 %v933_v0, %v846_v37  ;;  %v977_v48 = vadd.f32 %v976_v47, %v889_v38 }
 0x3c8   :  { %v935_v3 = vpop.f32.mrf.mxu0  ;;  %v1306_v4 = vpop.f32.mrf.mxu1 }
 0x3c9   :  { %v999_v5 = vmul.f32 %v987_v44, %v934_v46  ;;  %v1001_v6 = vmul.f32 %v995_v45, %v977_v48  ;;  %v936_v7 = vadd.f32 %v935_v3, %v848_v39 }
 0x3ca   :  { %v937_v8 = vpop.f32.mrf.mxu0  ;;  %v979_v9 = vpop.f32.mrf.mxu1 }
 0x3cb   :  { %v1005_v10 = vmul.f32 %v999_v5, %v1548_v25  ;;  %v1007_v11 = vmul.f32 %v1001_v6, %v1561_v28  ;;  %v1000_v12 = vmul.f32 %v991_v2, %v936_v7  ;;  %v938_v13 = vadd.f32 %v937_v8, %v850_v53 }
 0x3cc   :  { %v980_v14 = vadd.f32 %v979_v9, %v892_v42  ;;  %v939_v15 = vpop.f32.mrf.mxu0  ;;  %v1307_v16 = vpop.f32.mrf.mxu1 }
 0x3cd   :  { %1011 = vst [vmem:[#allocation2] sm:$0xff] %v1005_v10  ;;  %1013 = vst [vmem:[#allocation2 + $0x10] sm:$0xff] %v1007_v11  ;;  %v1006_v17 = vmul.f32 %v1000_v12, %v1538_v23  ;;  %v1002_v18 = vmul.f32 %v987_v44, %v938_v13  ;;  %v940_v19 = vadd.f32 %v939_v15, %v852_v1 }
 0x3ce   :  { %v1004_v20 = vmul.f32 %v995_v45, %v980_v14 }
 0x3cf   :  { %1012 = vst [vmem:[#allocation2 + $0x8] sm:$0xff] %v1006_v17  ;;  %v1008_v21 = vmul.f32 %v1002_v18, %v1556_v27  ;;  %v1003_v25 = vmul.f32 %v991_v2, %v940_v19 }
 0x3d0   :  { %v1010_v28 = vmul.f32 %v1004_v20, %v1566_v29 }
 0x3d1   :  { %1014 = vst [vmem:[#allocation2 + $0x18] sm:$0xff] %v1008_v21  ;;  %v1009_v22 = vmul.f32 %v1003_v25, %v1543_v24 }
 0x3d2   :  { %1016 = vst [vmem:[#allocation2 + $0x28] sm:$0xff] %v1010_v28 }
 0x3d3   :  { %1015 = vst [vmem:[#allocation2 + $0x20] sm:$0xff] %v1009_v22 }
 0x3d4   :  { %1356 = shalt.err (!%p1353_p4)
}
 0x3d5   :  { %s1371_s28 = smov 384   ;;  %s1372_s29 = smov 24  }
 0x3d6   :  { %1028 = dma.vmem_to_hbm [thread:$0]  %s1023_s26, 768, %s1782_s4, [#allocation3], %s1371_s28, %s1371_s28, %s1372_s29  }
 0x3d7   :  { %1365 = dma.done.wait [#allocation3], 768  }
 0x3d8   :  { %1366 = vsyncadd [#allocation3], 4294966528 }
 0x3d9   :  { %1032 = vsyncpa [#allocation3], 1 }

</bundles_post_ra>
